<compile_context>
chip_gen: v7x
topology: tpu7x:2x2x1
jax: 0.10.0
libtpu: 0.0.40
codegen_flags: <defaults>
</compile_context>

<pallas_src>
import math

import jax
import jax.numpy as jnp
from jax import lax
from jax.experimental import pallas as pl
from jax.experimental.pallas import tpu as pltpu

# ---- model hyper-parameters (small, consistent with the module) ----
DIM = 32
HEADS = 4
SEQ = 8
BATCH = 2
HEAD_DIM = DIM // HEADS


# ------------------------------- Pallas kernel --------------------------------
def attention_kernel(x_ref, wq_ref, wk_ref, wv_ref, bq_ref, bk_ref, bv_ref,
                     mask_ref, o_ref):
    B, T, C = x_ref.shape
    BH, _, D = wq_ref.shape          # BH = B * HEADS, D = head_dim
    H = BH // B

    x = x_ref[...]                                                   # (B, T, C)
    # Replicate the sequence across heads (leading-dim replication only; the
    # minor (T, C) tile layout is untouched -> no lane/sublane movement).
    xh = jnp.broadcast_to(x[:, None, :, :], (B, H, T, C)).reshape(BH, T, C)

    # batched matmul: contract C, batch over BH
    bmm = (((2,), (1,)), ((0,), (0,)))
    # Q weights/bias are pre-scaled by head_dim**-0.5 in the wrapper.
    q = lax.dot_general(xh, wq_ref[...], bmm,
                        preferred_element_type=jnp.float32) + bq_ref[...]   # (BH, T, D)
    k = lax.dot_general(xh, wk_ref[...], bmm,
                        preferred_element_type=jnp.float32) + bk_ref[...]   # (BH, T, D)
    # V is projected straight into the merged (h d) lane layout (weights are
    # zero outside each head's lane block), so no per-head scatter is needed.
    v = lax.dot_general(xh, wv_ref[...], bmm,
                        preferred_element_type=jnp.float32) + bv_ref[...]   # (BH, T, C)

    # scores: q @ k^T per (batch, head); scale already folded into q.
    s = lax.dot_general(q, k, (((2,), (2,)), ((0,), (0,))),
                        preferred_element_type=jnp.float32)                 # (BH, T, T)

    # causal mask as a precomputed additive bias (0 on/below diag, -1e30 above)
    s = s + mask_ref[...][None, :, :]

    # softmax (exp -> EUP; reciprocal -> EUP, exact to hold the 1e-4 tolerance)
    m = jnp.max(s, axis=-1, keepdims=True)
    e = jnp.exp(s - m)
    p = e * pl.reciprocal(jnp.sum(e, axis=-1, keepdims=True), approx=False)

    # attn @ v : each (b, h) slice contributes only to its own lane block, so
    # summing over the head axis yields the merged 'b t (h d)' output directly.
    o = lax.dot_general(p, v, bmm, preferred_element_type=jnp.float32)       # (BH, T, C)
    o_ref[...] = o.reshape(B, H, T, C).sum(axis=1)                           # one full-block store


# ------------------------------ Python wrapper ---------------------------------
def attention_forward(x, kernel_params):
    B, T, C = x.shape
    vmem = pltpu.MemorySpace.VMEM
    return pl.pallas_call(
        attention_kernel,
        out_shape=jax.ShapeDtypeStruct((B, T, C), jnp.float32),
        in_specs=[pl.BlockSpec(memory_space=vmem)] * 8,
        out_specs=pl.BlockSpec(memory_space=vmem),
        compiler_params=pltpu.CompilerParams(vmem_limit_bytes=4 * 1024 * 1024),
    )(x, *kernel_params)


def prepare_kernel_params(w, b, batch, num_heads, seq_len):
    """One-time re-layout of PyTorch-format kqv params for the kernel.

    w: (3C, C) PyTorch Linear weight (out_features, in_features)
    b: (3C,)   PyTorch Linear bias
    PyTorch chunk order is k, q, v.
    """
    C = w.shape[1]
    D = C // num_heads
    scale = D ** (-0.5)
    w_k, w_q, w_v = w[:C], w[C:2 * C], w[2 * C:]
    b_k, b_q, b_v = b[:C], b[C:2 * C], b[2 * C:]

    def per_head_w(wp):                       # (C_out, C_in) -> (B*H, C_in, D)
        wh = wp.reshape(num_heads, D, C).transpose(0, 2, 1)        # (H, C, D)
        return jnp.tile(wh, (batch, 1, 1))                         # bh = b*H + h

    def per_head_b(bp):                       # (C,) -> (B*H, T, D)
        bh = jnp.broadcast_to(bp.reshape(num_heads, 1, D), (num_heads, seq_len, D))
        return jnp.tile(bh, (batch, 1, 1))

    # V weight scattered into the merged lane layout: head h only writes lanes
    # [h*D, (h+1)*D); everything else is zero.
    cols = jnp.arange(C)
    head_mask = (cols[None, :] // D == jnp.arange(num_heads)[:, None]).astype(jnp.float32)  # (H, C)
    wv_sc = w_v.T[None, :, :] * head_mask[:, None, :]              # (H, C_in, C_out)
    wv_sc = jnp.tile(wv_sc, (batch, 1, 1))                         # (B*H, C, C)
    bv_sc = b_v[None, :] * head_mask                               # (H, C)
    bv_sc = jnp.broadcast_to(bv_sc[:, None, :], (num_heads, seq_len, C))
    bv_sc = jnp.tile(bv_sc, (batch, 1, 1))                         # (B*H, T, C)

    # Fold the attention scale into the Q projection (exact: pure rescale).
    wq_s = per_head_w(w_q) * scale
    bq_s = per_head_b(b_q) * scale

    # Additive causal-mask bias: 0 on/below the diagonal, -1e30 above.
    row = jnp.arange(seq_len)[:, None]
    col = jnp.arange(seq_len)[None, :]
    mask_bias = jnp.where(row >= col, 0.0, -1e30).astype(jnp.float32)   # (T, T)

    return (wq_s, per_head_w(w_k), wv_sc,
            bq_s, per_head_b(b_k), bv_sc, mask_bias)


# ------------------------- deterministic parameter init -------------------------
def init_attention_params(key, dim):
    # nn.Linear default init: U(-1/sqrt(fan_in), 1/sqrt(fan_in)) for W and b
    bound = 1.0 / math.sqrt(dim)
    kw, kb = jax.random.split(key)
    w = jax.random.uniform(kw, (3 * dim, dim), jnp.float32, -bound, bound)   # (out, in)
    b = jax.random.uniform(kb, (3 * dim,), jnp.float32, -bound, bound)
    return w, b


# ------------------------------ pure-JAX reference ------------------------------
def reference_attention(x, w, b, num_heads):
    B, T, C = x.shape
    D = C // num_heads
    kqv = x @ w.T + b
    k, q, v = kqv[..., :C], kqv[..., C:2 * C], kqv[..., 2 * C:]    # PyTorch order k, q, v

    def split(t):
        return t.reshape(B, T, num_heads, D).transpose(0, 2, 1, 3)

    q, k, v = split(q), split(k), split(v)
    s = jnp.einsum('bhtd,bhsd->bhts', q, k) * (D ** -0.5)
    mask = jnp.tril(jnp.ones((T, T)))
    s = jnp.where(mask == 0, -jnp.inf, s)
    p = jax.nn.softmax(s, axis=-1)
    o = jnp.einsum('bhts,bhsd->bhtd', p, v)
    return o.transpose(0, 2, 1, 3).reshape(B, T, C)


# ------------------------------------- main -------------------------------------
if __name__ == "__main__":
    root = jax.random.PRNGKey(0)
    kx, kp = jax.random.split(root)
    x = jax.random.normal(kx, (BATCH, SEQ, DIM), dtype=jnp.float32)

    w, b = init_attention_params(kp, DIM)
    kernel_params = prepare_kernel_params(w, b, BATCH, HEADS, SEQ)

    out = attention_forward(x, kernel_params)
    out = jax.block_until_ready(out)

    ref = reference_attention(x, w, b, HEADS)
    assert out.shape == (BATCH, SEQ, DIM)
    assert jnp.allclose(out, ref, rtol=1e-4, atol=1e-4), "mismatch vs pure-JAX reference"

    print("KERNEL_OK")
</pallas_src>

<mosaic_0001>
module attributes {stable_mosaic.version = 11 : i64} {
  func.func @attention_kernel(%arg0: memref<2x8x32xf32, #tpu.memory_space<vmem>>, %arg1: memref<8x32x8xf32, #tpu.memory_space<vmem>>, %arg2: memref<8x32x8xf32, #tpu.memory_space<vmem>>, %arg3: memref<8x32x32xf32, #tpu.memory_space<vmem>>, %arg4: memref<8x8x8xf32, #tpu.memory_space<vmem>>, %arg5: memref<8x8x8xf32, #tpu.memory_space<vmem>>, %arg6: memref<8x8x32xf32, #tpu.memory_space<vmem>>, %arg7: memref<8x8xf32, #tpu.memory_space<vmem>>, %arg8: memref<2x8x32xf32, #tpu.memory_space<vmem>>) attributes {dimension_semantics = [], scalar_prefetch = 0 : i64, scratch_operands = 0 : i64, tpu.core_type = #tpu.core_type<tc>} {
    %c0 = arith.constant 0 : index
    %c0_0 = arith.constant 0 : index
    %c0_1 = arith.constant 0 : index
    %0 = vector.load %arg0[%c0, %c0_0, %c0_1] : memref<2x8x32xf32, #tpu.memory_space<vmem>>, vector<2x8x32xf32>
    %1 = vector.shape_cast %0 : vector<2x8x32xf32> to vector<2x1x8x32xf32>
    %2 = vector.shape_cast %1 : vector<2x1x8x32xf32> to vector<2x1x8x32xf32>
    %3 = vector.broadcast %2 : vector<2x1x8x32xf32> to vector<2x4x8x32xf32>
    %4 = vector.shape_cast %3 : vector<2x4x8x32xf32> to vector<8x8x32xf32>
    %c0_2 = arith.constant 0 : index
    %c0_3 = arith.constant 0 : index
    %c0_4 = arith.constant 0 : index
    %5 = vector.load %arg1[%c0_2, %c0_3, %c0_4] : memref<8x32x8xf32, #tpu.memory_space<vmem>>, vector<8x32x8xf32>
    %cst = arith.constant dense<0.000000e+00> : vector<8x8x8xf32>
    %6 = tpu.matmul %4, %5, %cst {dimension_numbers = #tpu.dot_dimension_numbers<[2], [1], [1], [2], [0, 0, 0, 1, 1, 2], [0], [0]>} : vector<8x8x32xf32>, vector<8x32x8xf32>, vector<8x8x8xf32> -> vector<8x8x8xf32>
    %c0_5 = arith.constant 0 : index
    %c0_6 = arith.constant 0 : index
    %c0_7 = arith.constant 0 : index
    %7 = vector.load %arg4[%c0_5, %c0_6, %c0_7] : memref<8x8x8xf32, #tpu.memory_space<vmem>>, vector<8x8x8xf32>
    %8 = arith.addf %6, %7 : vector<8x8x8xf32>
    %c0_8 = arith.constant 0 : index
    %c0_9 = arith.constant 0 : index
    %c0_10 = arith.constant 0 : index
    %9 = vector.load %arg2[%c0_8, %c0_9, %c0_10] : memref<8x32x8xf32, #tpu.memory_space<vmem>>, vector<8x32x8xf32>
    %cst_11 = arith.constant dense<0.000000e+00> : vector<8x8x8xf32>
    %10 = tpu.matmul %4, %9, %cst_11 {dimension_numbers = #tpu.dot_dimension_numbers<[2], [1], [1], [2], [0, 0, 0, 1, 1, 2], [0], [0]>} : vector<8x8x32xf32>, vector<8x32x8xf32>, vector<8x8x8xf32> -> vector<8x8x8xf32>
    %c0_12 = arith.constant 0 : index
    %c0_13 = arith.constant 0 : index
    %c0_14 = arith.constant 0 : index
    %11 = vector.load %arg5[%c0_12, %c0_13, %c0_14] : memref<8x8x8xf32, #tpu.memory_space<vmem>>, vector<8x8x8xf32>
    %12 = arith.addf %10, %11 : vector<8x8x8xf32>
    %c0_15 = arith.constant 0 : index
    %c0_16 = arith.constant 0 : index
    %c0_17 = arith.constant 0 : index
    %13 = vector.load %arg3[%c0_15, %c0_16, %c0_17] : memref<8x32x32xf32, #tpu.memory_space<vmem>>, vector<8x32x32xf32>
    %cst_18 = arith.constant dense<0.000000e+00> : vector<8x8x32xf32>
    %14 = tpu.matmul %4, %13, %cst_18 {dimension_numbers = #tpu.dot_dimension_numbers<[2], [1], [1], [2], [0, 0, 0, 1, 1, 2], [0], [0]>} : vector<8x8x32xf32>, vector<8x32x32xf32>, vector<8x8x32xf32> -> vector<8x8x32xf32>
    %c0_19 = arith.constant 0 : index
    %c0_20 = arith.constant 0 : index
    %c0_21 = arith.constant 0 : index
    %15 = vector.load %arg6[%c0_19, %c0_20, %c0_21] : memref<8x8x32xf32, #tpu.memory_space<vmem>>, vector<8x8x32xf32>
    %16 = arith.addf %14, %15 : vector<8x8x32xf32>
    %cst_22 = arith.constant dense<0.000000e+00> : vector<8x8x8xf32>
    %17 = tpu.matmul %8, %12, %cst_22 {dimension_numbers = #tpu.dot_dimension_numbers<[2], [2], [1], [1], [0, 0, 0, 1, 1, 1], [0], [0]>} : vector<8x8x8xf32>, vector<8x8x8xf32>, vector<8x8x8xf32> -> vector<8x8x8xf32>
    %c0_23 = arith.constant 0 : index
    %c0_24 = arith.constant 0 : index
    %18 = vector.load %arg7[%c0_23, %c0_24] : memref<8x8xf32, #tpu.memory_space<vmem>>, vector<8x8xf32>
    %19 = vector.shape_cast %18 : vector<8x8xf32> to vector<1x8x8xf32>
    %20 = vector.broadcast %19 : vector<1x8x8xf32> to vector<8x8x8xf32>
    %21 = arith.addf %17, %20 : vector<8x8x8xf32>
    %cst_25 = arith.constant dense<0xFF800000> : vector<8x8xf32>
    %22 = vector.multi_reduction <maximumf>, %21, %cst_25 [2] : vector<8x8x8xf32> to vector<8x8xf32>
    %23 = vector.shape_cast %22 : vector<8x8xf32> to vector<8x8x1xf32>
    %24 = vector.broadcast %23 : vector<8x8x1xf32> to vector<8x8x8xf32>
    %25 = arith.subf %21, %24 : vector<8x8x8xf32>
    %26 = math.exp %25 : vector<8x8x8xf32>
    %cst_26 = arith.constant dense<0.000000e+00> : vector<8x8xf32>
    %27 = vector.multi_reduction <add>, %26, %cst_26 [2] : vector<8x8x8xf32> to vector<8x8xf32>
    %28 = vector.shape_cast %27 : vector<8x8xf32> to vector<8x8x1xf32>
    %29 = tpu.reciprocal %28 : vector<8x8x1xf32> -> vector<8x8x1xf32>
    %30 = vector.broadcast %29 : vector<8x8x1xf32> to vector<8x8x8xf32>
    %31 = arith.mulf %26, %30 : vector<8x8x8xf32>
    %cst_27 = arith.constant dense<0.000000e+00> : vector<8x8x32xf32>
    %32 = tpu.matmul %31, %16, %cst_27 {dimension_numbers = #tpu.dot_dimension_numbers<[2], [1], [1], [2], [0, 0, 0, 1, 1, 2], [0], [0]>} : vector<8x8x8xf32>, vector<8x8x32xf32>, vector<8x8x32xf32> -> vector<8x8x32xf32>
    %33 = vector.shape_cast %32 : vector<8x8x32xf32> to vector<2x4x8x32xf32>
    %cst_28 = arith.constant dense<0.000000e+00> : vector<2x8x32xf32>
    %34 = vector.multi_reduction <add>, %33, %cst_28 [1] : vector<2x4x8x32xf32> to vector<2x8x32xf32>
    %c0_29 = arith.constant 0 : index
    %c0_30 = arith.constant 0 : index
    %c0_31 = arith.constant 0 : index
    %35 = vector.load %arg8[%c0_29, %c0_30, %c0_31] : memref<2x8x32xf32, #tpu.memory_space<vmem>>, vector<2x8x32xf32>
    tpu.vector_store %arg8[%c0_29, %c0_30, %c0_31], %34 {strides = array<i32>} : memref<2x8x32xf32, #tpu.memory_space<vmem>>, vector<2x8x32xf32>,
    return
  }
}

</mosaic_0001>

<bundles_post_ra>
// kernel: tpu_custom_call.1
= control target key start
LH: loop header
LB: loop body
LE: loop exit
PB: predicated region body
PF: predicated region fallthrough
CT: control target
= control target key end

     0   :  { %v3903_v3 = vmov 0.0|0.0   ;;  %vm3904_vm0 = vmmov 0   ;;  %v3905_v11 = vmov 0.0   ;;  %vm72_vm1 = vcmask 261120   ;;  %s4621_s0 = inlined_call_operand.vmem [shape: f32[2,8,32], index: 0, kind: input, shape index: {}]   ;;  %s4622_s1 = inlined_call_operand.vmem [shape: f32[8,32,8], index: 1, kind: input, shape index: {}]   ;;  %s4623_s2 = inlined_call_operand.vmem [shape: f32[8,32,8], index: 2, kind: input, shape index: {}]   ;;  %s4624_s3 = inlined_call_operand.vmem [shape: f32[8,32,32], index: 3, kind: input, shape index: {}]   ;;  %s4625_s4 = inlined_call_operand.vmem [shape: f32[8,8,8], index: 4, kind: input, shape index: {}]   ;;  %s4626_s5 = inlined_call_operand.vmem [shape: f32[8,8,8], index: 5, kind: input, shape index: {}]   ;;  %s4627_s6 = inlined_call_operand.vmem [shape: f32[8,8,32], index: 6, kind: input, shape index: {}]   ;;  %s4628_s7 = inlined_call_operand.vmem [shape: f32[8,8], index: 7, kind: input, shape index: {}]   ;;  %s4629_s8 = inlined_call_operand.hbm [shape: f32[2,8,32], index: 8, kind: output, shape index: {}]  }
   0x1   :  { %v32_v0 = vld [vmem:[%s4622_s1] sm:$0xff]  ;;  %v33_v1 = vld [vmem:[%s4622_s1 + $0x8] sm:$0xff]  ;;  %3697 = vmatprep.subr.bf16.mxu0 %v3903_v3  ;;  %3703 = vmatprep.subr.bf16.mxu1 %v3903_v3  ;;  %v34_v6 = vld [vmem:[%s4622_s1 + $0x10] sm:$0xff] }
   0x2   :  { %v36_v2 = vld [vmem:[%s4622_s1 + $0x20] sm:$0xff]  ;;  %v3698_v4 = vpack.c.bf16 %v33_v1, %v32_v0  ;;  %v37_v5 = vld [vmem:[%s4622_s1 + $0x28] sm:$0xff]  ;;  %v35_v7 = vld [vmem:[%s4622_s1 + $0x18] sm:$0xff]  ;;  %3361 = vmatprep.mubr.msk.f32.mxu0 %vm3904_vm0, %v3905_v11  ;;  %3372 = vmatprep.mubr.msk.f32.mxu1 %vm3904_vm0, %v3905_v11 }
   0x3   :  { %v3704_v8 = vpack.c.bf16 %v37_v5, %v36_v2  ;;  %v38_v9 = vld [vmem:[%s4622_s1 + $0x30] sm:$0xff]  ;;  %v39_v10 = vld [vmem:[%s4622_s1 + $0x38] sm:$0xff]  ;;  %v3701_v12 = vpack.c.bf16 %v35_v7, %v34_v6  ;;  %v40_v14 = vld [vmem:[%s4622_s1 + $0x40] sm:$0xff] }
   0x4   :  { %3699 = vmatpush3.bf16.msra.mxu0 %v3698_v4  ;;  %v3707_v13 = vpack.c.bf16 %v39_v10, %v38_v9  ;;  %v41_v15 = vld [vmem:[%s4622_s1 + $0x48] sm:$0xff]  ;;  %v44_v16 = vld [vmem:[%s4622_s1 + $0x60] sm:$0xff]  ;;  %v42_v21 = vld [vmem:[%s4622_s1 + $0x50] sm:$0xff] }
   0x5   :  { %3705 = vmatpush3.bf16.msra.mxu1 %v3704_v8  ;;  %3700 = vmatprep.subr.bf16.mxu0 %v3903_v3  ;;  %v45_v17 = vld [vmem:[%s4622_s1 + $0x68] sm:$0xff]  ;;  %v4001_v18 = vld [vmem:[%s4621_s0] sm:$0xff]  ;;  %v3710_v19 = vpack.c.bf16 %v41_v15, %v40_v14  ;;  %v43_v22 = vld [vmem:[%s4622_s1 + $0x58] sm:$0xff] }
   0x6   :  { %3706 = vmatprep.subr.bf16.mxu1 %v3903_v3  ;;  %v3716_v20 = vpack.c.bf16 %v45_v17, %v44_v16  ;;  %v46_v23 = vld [vmem:[%s4622_s1 + $0x70] sm:$0xff]  ;;  %v47_v24 = vld [vmem:[%s4622_s1 + $0x78] sm:$0xff]  ;;  %v3713_v25 = vpack.c.bf16 %v43_v22, %v42_v21  ;;  %v48_v27 = vld [vmem:[%s4622_s1 + $0x80] sm:$0xff] }
   0x7   :  { %v3719_v26 = vpack.c.bf16 %v47_v24, %v46_v23  ;;  %v49_v28 = vld [vmem:[%s4622_s1 + $0x88] sm:$0xff]  ;;  %v52_v29 = vld [vmem:[%s4622_s1 + $0xa0] sm:$0xff]  ;;  %v50_v33 = vld [vmem:[%s4622_s1 + $0x90] sm:$0xff] }
   0x8   :  { %3702 = vmatpush3.bf16.msra.mxu0 %v3701_v12  ;;  %v53_v30 = vld [vmem:[%s4622_s1 + $0xa8] sm:$0xff]  ;;  %v3722_v31 = vpack.c.bf16 %v49_v28, %v48_v27  ;;  %v51_v34 = vld [vmem:[%s4622_s1 + $0x98] sm:$0xff]  ;;  %v54_v35 = vld [vmem:[%s4622_s1 + $0xb0] sm:$0xff] }
   0x9   :  { %3708 = vmatpush3.bf16.msra.mxu1 %v3707_v13  ;;  %3709 = vmatprep.subr.bf16.mxu0 %v3903_v3  ;;  %v3728_v32 = vpack.c.bf16 %v53_v30, %v52_v29  ;;  %v55_v36 = vld [vmem:[%s4622_s1 + $0xb8] sm:$0xff]  ;;  %v3725_v37 = vpack.c.bf16 %v51_v34, %v50_v33  ;;  %v56_v39 = vld [vmem:[%s4622_s1 + $0xc0] sm:$0xff]  ;;  %v57_v40 = vld [vmem:[%s4622_s1 + $0xc8] sm:$0xff] }
   0xa   :  { %3715 = vmatprep.subr.bf16.mxu1 %v3903_v3  ;;  %v3731_v38 = vpack.c.bf16 %v55_v36, %v54_v35  ;;  %v60_v41 = vld [vmem:[%s4622_s1 + $0xe0] sm:$0xff]  ;;  %v61_v42 = vld [vmem:[%s4622_s1 + $0xe8] sm:$0xff]  ;;  %v3734_v44 = vpack.c.bf16 %v57_v40, %v56_v39 }
   0xb   :  { %3362 = vmatmul.mubr.msk.f32.vlgmr.msra.gmra.mrb[0].mxu0 %vm72_vm1, %v4001_v18  ;;  %v4078_v43 = vld [vmem:[%s4621_s0 + $0x8] sm:$0xff] }
   0xc   :  { %3373 = vmatmul.mubr.msk.f32.vlgmr.msra.gmra.mrb[0].mxu1 %vm72_vm1, %v4001_v18  ;;  %3711 = vmatpush3.bf16.msra.mxu0 %v3710_v19 }
   0xd   :  { %3717 = vmatpush3.bf16.msra.mxu1 %v3716_v20  ;;  %3712 = vmatprep.subr.bf16.mxu0 %v3903_v3 }
   0xe   :  { %3718 = vmatprep.subr.bf16.mxu1 %v3903_v3  ;;  %3383 = vmatprep.mubr.msk.f32.mxu0 %vm3904_vm0, %v3905_v11 }
   0xf   :  { %3394 = vmatprep.mubr.msk.f32.mxu1 %vm3904_vm0, %v3905_v11 }
  0x10   :  { %3714 = vmatpush3.bf16.msra.mxu0 %v3713_v25 }
  0x11   :  { %3720 = vmatpush3.bf16.msra.mxu1 %v3719_v26  ;;  %3721 = vmatprep.subr.bf16.mxu0 %v3903_v3 }
  0x12   :  { %3727 = vmatprep.subr.bf16.mxu1 %v3903_v3 }
  0x13   :  { %3384 = vmatmul.mubr.msk.f32.vlgmr.msra.gmra.mrb[2].mxu0 %vm72_vm1, %v4001_v18 }
  0x14   :  { %3395 = vmatmul.mubr.msk.f32.vlgmr.msra.gmra.mrb[2].mxu1 %vm72_vm1, %v4001_v18  ;;  %3723 = vmatpush3.bf16.msra.mxu0 %v3722_v31 }
  0x15   :  { %3729 = vmatpush3.bf16.msra.mxu1 %v3728_v32  ;;  %3724 = vmatprep.subr.bf16.mxu0 %v3903_v3 }
  0x16   :  { %3730 = vmatprep.subr.bf16.mxu1 %v3903_v3  ;;  %3405 = vmatprep.mubr.msk.f32.mxu0 %vm3904_vm0, %v3905_v11 }
  0x17   :  { %3416 = vmatprep.mubr.msk.f32.mxu1 %vm3904_vm0, %v3905_v11 }
  0x18   :  { %3726 = vmatpush3.bf16.msra.mxu0 %v3725_v37 }
  0x19   :  { %13 = vsyncpa [#allocation3], 0  ;;  %3732 = vmatpush3.bf16.msra.mxu1 %v3731_v38  ;;  %3733 = vmatprep.subr.bf16.mxu0 %v3903_v3  ;;  %v3740_v45 = vpack.c.bf16 %v61_v42, %v60_v41  ;;  %v58_v46 = vld [vmem:[%s4622_s1 + $0xd0] sm:$0xff]  ;;  %v59_v47 = vld [vmem:[%s4622_s1 + $0xd8] sm:$0xff]  ;;  %vm1840_vm2 = vcmask 64512  }
  0x1a   :  { %3739 = vmatprep.subr.bf16.mxu1 %v3903_v3  ;;  %v62_v48 = vld [vmem:[%s4622_s1 + $0xf0] sm:$0xff]  ;;  %v63_v49 = vld [vmem:[%s4622_s1 + $0xf8] sm:$0xff]  ;;  %v3737_v50 = vpack.c.bf16 %v59_v47, %v58_v46  ;;  %v639_v52 = vld [vmem:[%s4623_s2] sm:$0xff] }
  0x1b   :  { %3406 = vmatmul.mubr.msk.f32.vlgmr.msra.gmra.mrb[4].mxu0 %vm72_vm1, %v4078_v43  ;;  %v3743_v51 = vpack.c.bf16 %v63_v49, %v62_v48  ;;  %v640_v53 = vld [vmem:[%s4623_s2 + $0x8] sm:$0xff]  ;;  %v643_v54 = vld [vmem:[%s4623_s2 + $0x20] sm:$0xff]  ;;  %v641_v58 = vld [vmem:[%s4623_s2 + $0x10] sm:$0xff] }
  0x1c   :  { %3417 = vmatmul.mubr.msk.f32.vlgmr.msra.gmra.mrb[4].mxu1 %vm72_vm1, %v4078_v43  ;;  %3735 = vmatpush3.bf16.msra.mxu0 %v3734_v44  ;;  %v644_v55 = vld [vmem:[%s4623_s2 + $0x28] sm:$0xff]  ;;  %v3746_v56 = vpack.c.bf16 %v640_v53, %v639_v52  ;;  %v642_v59 = vld [vmem:[%s4623_s2 + $0x18] sm:$0xff]  ;;  %v645_v60 = vld [vmem:[%s4623_s2 + $0x30] sm:$0xff] }
  0x1d   :  { %3741 = vmatpush3.bf16.msra.mxu1 %v3740_v45  ;;  %3736 = vmatprep.subr.bf16.mxu0 %v3903_v3  ;;  %v3752_v57 = vpack.c.bf16 %v644_v55, %v643_v54  ;;  %v646_v61 = vld [vmem:[%s4623_s2 + $0x38] sm:$0xff]  ;;  %v3749_v62 = vpack.c.bf16 %v642_v59, %v641_v58  ;;  %v647_v0 = vld [vmem:[%s4623_s2 + $0x40] sm:$0xff]  ;;  %v648_v1 = vld [vmem:[%s4623_s2 + $0x48] sm:$0xff] }
  0x1e   :  { %3742 = vmatprep.subr.bf16.mxu1 %v3903_v3  ;;  %3427 = vmatprep.mubr.msk.f32.mxu0 %vm3904_vm0, %v3905_v11  ;;  %v3755_v63 = vpack.c.bf16 %v646_v61, %v645_v60  ;;  %v651_v2 = vld [vmem:[%s4623_s2 + $0x60] sm:$0xff]  ;;  %v652_v4 = vld [vmem:[%s4623_s2 + $0x68] sm:$0xff]  ;;  %v3758_v5 = vpack.c.bf16 %v648_v1, %v647_v0  ;;  %v649_v7 = vld [vmem:[%s4623_s2 + $0x50] sm:$0xff] }
  0x1f   :  { %3438 = vmatprep.mubr.msk.f32.mxu1 %vm3904_vm0, %v3905_v11  ;;  %v3764_v6 = vpack.c.bf16 %v652_v4, %v651_v2  ;;  %v650_v8 = vld [vmem:[%s4623_s2 + $0x58] sm:$0xff]  ;;  %v653_v9 = vld [vmem:[%s4623_s2 + $0x70] sm:$0xff]  ;;  %v655_v14 = vld [vmem:[%s4623_s2 + $0x80] sm:$0xff] }
  0x20   :  { %3738 = vmatpush3.bf16.msra.mxu0 %v3737_v50  ;;  %v654_v10 = vld [vmem:[%s4623_s2 + $0x78] sm:$0xff]  ;;  %v3761_v12 = vpack.c.bf16 %v650_v8, %v649_v7  ;;  %v656_v15 = vld [vmem:[%s4623_s2 + $0x88] sm:$0xff]  ;;  %v659_v16 = vld [vmem:[%s4623_s2 + $0xa0] sm:$0xff] }
  0x21   :  { %3744 = vmatpush3.bf16.msra.mxu1 %v3743_v51  ;;  %3745 = vmatprep.subr.bf16.mxu0 %v3903_v3  ;;  %v3767_v13 = vpack.c.bf16 %v654_v10, %v653_v9  ;;  %v660_v17 = vld [vmem:[%s4623_s2 + $0xa8] sm:$0xff]  ;;  %v3770_v19 = vpack.c.bf16 %v656_v15, %v655_v14  ;;  %v657_v21 = vld [vmem:[%s4623_s2 + $0x90] sm:$0xff]  ;;  %v658_v22 = vld [vmem:[%s4623_s2 + $0x98] sm:$0xff] }
  0x22   :  { %3751 = vmatprep.subr.bf16.mxu1 %v3903_v3  ;;  %v3776_v20 = vpack.c.bf16 %v660_v17, %v659_v16  ;;  %v661_v23 = vld [vmem:[%s4623_s2 + $0xb0] sm:$0xff]  ;;  %v662_v24 = vld [vmem:[%s4623_s2 + $0xb8] sm:$0xff]  ;;  %v3773_v25 = vpack.c.bf16 %v658_v22, %v657_v21  ;;  %v663_v27 = vld [vmem:[%s4623_s2 + $0xc0] sm:$0xff] }
  0x23   :  { %3428 = vmatmul.mubr.msk.f32.vlgmr.msra.gmra.mrb[6].mxu0 %vm72_vm1, %v4078_v43  ;;  %v3779_v26 = vpack.c.bf16 %v662_v24, %v661_v23  ;;  %v664_v28 = vld [vmem:[%s4623_s2 + $0xc8] sm:$0xff]  ;;  %v667_v29 = vld [vmem:[%s4623_s2 + $0xe0] sm:$0xff]  ;;  %v665_v33 = vld [vmem:[%s4623_s2 + $0xd0] sm:$0xff] }
  0x24   :  { %3439 = vmatmul.mubr.msk.f32.vlgmr.msra.gmra.mrb[6].mxu1 %vm72_vm1, %v4078_v43  ;;  %3747 = vmatpush3.bf16.msra.mxu0 %v3746_v56  ;;  %v668_v30 = vld [vmem:[%s4623_s2 + $0xe8] sm:$0xff]  ;;  %v3782_v31 = vpack.c.bf16 %v664_v28, %v663_v27  ;;  %v666_v34 = vld [vmem:[%s4623_s2 + $0xd8] sm:$0xff]  ;;  %v669_v35 = vld [vmem:[%s4623_s2 + $0xf0] sm:$0xff] }
  0x25   :  { %3753 = vmatpush3.bf16.msra.mxu1 %v3752_v57  ;;  %3748 = vmatprep.subr.bf16.mxu0 %v3903_v3  ;;  %v3788_v32 = vpack.c.bf16 %v668_v30, %v667_v29  ;;  %v670_v36 = vld [vmem:[%s4623_s2 + $0xf8] sm:$0xff]  ;;  %v3785_v37 = vpack.c.bf16 %v666_v34, %v665_v33  ;;  %v1239_v39 = vld [vmem:[%s4624_s3] sm:$0xff]  ;;  %v1240_v40 = vld [vmem:[%s4624_s3 + $0x8] sm:$0xff] }
  0x26   :  { %3754 = vmatprep.subr.bf16.mxu1 %v3903_v3  ;;  %3449 = vmatprep.mubr.msk.f32.mxu0 %vm3904_vm0, %v3905_v11  ;;  %v3791_v38 = vpack.c.bf16 %v670_v36, %v669_v35  ;;  %v1243_v41 = vld [vmem:[%s4624_s3 + $0x20] sm:$0xff]  ;;  %v1244_v42 = vld [vmem:[%s4624_s3 + $0x28] sm:$0xff]  ;;  %v3794_v44 = vpack.c.bf16 %v1240_v40, %v1239_v39  ;;  %v1241_v46 = vld [vmem:[%s4624_s3 + $0x10] sm:$0xff] }
  0x27   :  { %3460 = vmatprep.mubr.msk.f32.mxu1 %vm3904_vm0, %v3905_v11  ;;  %v3800_v45 = vpack.c.bf16 %v1244_v42, %v1243_v41  ;;  %v1242_v47 = vld [vmem:[%s4624_s3 + $0x18] sm:$0xff]  ;;  %v1245_v48 = vld [vmem:[%s4624_s3 + $0x30] sm:$0xff]  ;;  %v1247_v52 = vld [vmem:[%s4624_s3 + $0x40] sm:$0xff] }
  0x28   :  { %3750 = vmatpush3.bf16.msra.mxu0 %v3749_v62  ;;  %v3797_v49 = vpack.c.bf16 %v1242_v47, %v1241_v46  ;;  %v1246_v50 = vld [vmem:[%s4624_s3 + $0x38] sm:$0xff]  ;;  %v1248_v53 = vld [vmem:[%s4624_s3 + $0x48] sm:$0xff]  ;;  %v1251_v54 = vld [vmem:[%s4624_s3 + $0x60] sm:$0xff] }
  0x29   :  { %3756 = vmatpush3.bf16.msra.mxu1 %v3755_v63  ;;  %3757 = vmatprep.subr.bf16.mxu0 %v3903_v3  ;;  %v3803_v51 = vpack.c.bf16 %v1246_v50, %v1245_v48  ;;  %v3806_v55 = vpack.c.bf16 %v1248_v53, %v1247_v52  ;;  %v1252_v56 = vld [vmem:[%s4624_s3 + $0x68] sm:$0xff]  ;;  %v1249_v58 = vld [vmem:[%s4624_s3 + $0x50] sm:$0xff]  ;;  %v1250_v59 = vld [vmem:[%s4624_s3 + $0x58] sm:$0xff] }
  0x2a   :  { %3763 = vmatprep.subr.bf16.mxu1 %v3903_v3  ;;  %v3812_v57 = vpack.c.bf16 %v1252_v56, %v1251_v54  ;;  %v1253_v60 = vld [vmem:[%s4624_s3 + $0x70] sm:$0xff]  ;;  %v3809_v61 = vpack.c.bf16 %v1250_v59, %v1249_v58  ;;  %v1254_v62 = vld [vmem:[%s4624_s3 + $0x78] sm:$0xff]  ;;  %v1255_v0 = vld [vmem:[%s4624_s3 + $0x80] sm:$0xff] }
  0x2b   :  { %3450 = vmatmul.mubr.msk.f32.vlgmr.msra.gmra.mrb[8].mxu0 %vm72_vm1, %v4001_v18  ;;  %v3815_v63 = vpack.c.bf16 %v1254_v62, %v1253_v60  ;;  %v1256_v1 = vld [vmem:[%s4624_s3 + $0x88] sm:$0xff]  ;;  %v1259_v2 = vld [vmem:[%s4624_s3 + $0xa0] sm:$0xff]  ;;  %v1257_v7 = vld [vmem:[%s4624_s3 + $0x90] sm:$0xff] }
  0x2c   :  { %3461 = vmatmul.mubr.msk.f32.vlgmr.msra.gmra.mrb[8].mxu1 %vm72_vm1, %v4001_v18  ;;  %3759 = vmatpush3.bf16.msra.mxu0 %v3758_v5  ;;  %v3818_v4 = vpack.c.bf16 %v1256_v1, %v1255_v0  ;;  %v1260_v5 = vld [vmem:[%s4624_s3 + $0xa8] sm:$0xff]  ;;  %v1258_v8 = vld [vmem:[%s4624_s3 + $0x98] sm:$0xff]  ;;  %v1261_v9 = vld [vmem:[%s4624_s3 + $0xb0] sm:$0xff] }
  0x2d   :  { %3765 = vmatpush3.bf16.msra.mxu1 %v3764_v6  ;;  %3760 = vmatprep.subr.bf16.mxu0 %v3903_v3  ;;  %v3824_v6 = vpack.c.bf16 %v1260_v5, %v1259_v2  ;;  %v3821_v10 = vpack.c.bf16 %v1258_v8, %v1257_v7  ;;  %v1264_v14 = vld [vmem:[%s4624_s3 + $0xc8] sm:$0xff]  ;;  %v1267_v15 = vld [vmem:[%s4624_s3 + $0xe0] sm:$0xff]  ;;  %v1266_v21 = vld [vmem:[%s4624_s3 + $0xd8] sm:$0xff] }
  0x2e   :  { %3766 = vmatprep.subr.bf16.mxu1 %v3903_v3  ;;  %3471 = vmatprep.mubr.msk.f32.mxu0 %vm3904_vm0, %v3905_v11  ;;  %v1268_v17 = vld [vmem:[%s4624_s3 + $0xe8] sm:$0xff]  ;;  %v1269_v22 = vld [vmem:[%s4624_s3 + $0xf0] sm:$0xff]  ;;  %v1270_v24 = vld [vmem:[%s4624_s3 + $0xf8] sm:$0xff] }
  0x2f   :  { %3482 = vmatprep.mubr.msk.f32.mxu1 %vm3904_vm0, %v3905_v11  ;;  %v671_v40 = vld [vmem:[%s4626_s5] sm:$0xff]  ;;  %v672_v41 = vld [vmem:[%s4626_s5 + $0x8] sm:$0xff]  ;;  %v673_v53 = vld [vmem:[%s4626_s5 + $0x10] sm:$0xff] }
  0x30   :  { %3762 = vmatpush3.bf16.msra.mxu0 %v3761_v12  ;;  %v65_v48 = vld [vmem:[%s4625_s4 + $0x8] sm:$0xff]  ;;  %v674_v54 = vld [vmem:[%s4626_s5 + $0x18] sm:$0xff]  ;;  %v66_v56 = vld [vmem:[%s4625_s4 + $0x10] sm:$0xff] }
  0x31   :  { %3768 = vmatpush3.bf16.msra.mxu1 %v3767_v13  ;;  %3769 = vmatprep.subr.bf16.mxu0 %v3903_v3  ;;  %v1263_v13 = vld [vmem:[%s4624_s3 + $0xc0] sm:$0xff]  ;;  %v67_v60 = vld [vmem:[%s4625_s4 + $0x18] sm:$0xff]  ;;  %v676_v2 = vld [vmem:[%s4626_s5 + $0x28] sm:$0xff] }
  0x32   :  { %3775 = vmatprep.subr.bf16.mxu1 %v3903_v3  ;;  %v3830_v16 = vpack.c.bf16 %v1264_v14, %v1263_v13  ;;  %v675_v1 = vld [vmem:[%s4626_s5 + $0x20] sm:$0xff]  ;;  %v677_v14 = vld [vmem:[%s4626_s5 + $0x30] sm:$0xff] }
  0x33   :  { %3472 = vmatmul.mubr.msk.f32.vlgmr.msra.gmra.mrb[10].mxu0 %vm72_vm1, %v4001_v18  ;;  %v68_v5 = vld [vmem:[%s4625_s4 + $0x20] sm:$0xff] }
  0x34   :  { %3483 = vmatmul.mubr.msk.f32.vlgmr.msra.gmra.mrb[10].mxu1 %vm72_vm1, %v4001_v18  ;;  %3771 = vmatpush3.bf16.msra.mxu0 %v3770_v19  ;;  %v3836_v19 = vpack.c.bf16 %v1268_v17, %v1267_v15  ;;  %v678_v15 = vld [vmem:[%s4626_s5 + $0x38] sm:$0xff]  ;;  %v70_v17 = vld [vmem:[%s4625_s4 + $0x30] sm:$0xff] }
  0x35   :  { %3777 = vmatpush3.bf16.msra.mxu1 %v3776_v20  ;;  %3772 = vmatprep.subr.bf16.mxu0 %v3903_v3  ;;  %v1265_v20 = vld [vmem:[%s4624_s3 + $0xd0] sm:$0xff] }
  0x36   :  { %3778 = vmatprep.subr.bf16.mxu1 %v3903_v3  ;;  %3493 = vmatprep.mubr.msk.f32.mxu0 %vm3904_vm0, %v3905_v11  ;;  %v3833_v23 = vpack.c.bf16 %v1266_v21, %v1265_v20 }
  0x37   :  { %3504 = vmatprep.mubr.msk.f32.mxu1 %vm3904_vm0, %v3905_v11 }
  0x38   :  { %3774 = vmatpush3.bf16.msra.mxu0 %v3773_v25  ;;  %v3839_v25 = vpack.c.bf16 %v1270_v24, %v1269_v22  ;;  %v71_v22 = vld [vmem:[%s4625_s4 + $0x38] sm:$0xff] }
  0x39   :  { %3780 = vmatpush3.bf16.msra.mxu1 %v3779_v26  ;;  %3781 = vmatprep.subr.bf16.mxu0 %v3903_v3 }
  0x3a   :  { %3787 = vmatprep.subr.bf16.mxu1 %v3903_v3 }
  0x3b   :  { %3494 = vmatmul.mubr.msk.f32.vlgmr.msra.gmra.mrb[12].mxu0 %vm72_vm1, %v4078_v43 }
  0x3c   :  { %3505 = vmatmul.mubr.msk.f32.vlgmr.msra.gmra.mrb[12].mxu1 %vm72_vm1, %v4078_v43  ;;  %3783 = vmatpush3.bf16.msra.mxu0 %v3782_v31 }
  0x3d   :  { %3789 = vmatpush3.bf16.msra.mxu1 %v3788_v32  ;;  %3784 = vmatprep.subr.bf16.mxu0 %v3903_v3 }
  0x3e   :  { %3790 = vmatprep.subr.bf16.mxu1 %v3903_v3  ;;  %3515 = vmatprep.mubr.msk.f32.mxu0 %vm3904_vm0, %v3905_v11 }
  0x3f   :  { %3526 = vmatprep.mubr.msk.f32.mxu1 %vm3904_vm0, %v3905_v11 }
  0x40   :  { %3786 = vmatpush3.bf16.msra.mxu0 %v3785_v37 }
  0x41   :  { %3792 = vmatpush3.bf16.msra.mxu1 %v3791_v38  ;;  %3793 = vmatprep.subr.bf16.mxu0 %v3903_v3 }
  0x42   :  { %3799 = vmatprep.subr.bf16.mxu1 %v3903_v3 }
  0x43   :  { %3516 = vmatmul.mubr.msk.f32.vlgmr.msra.gmra.mrb[14].mxu0 %vm72_vm1, %v4078_v43 }
  0x44   :  { %3527 = vmatmul.mubr.msk.f32.vlgmr.msra.gmra.mrb[14].mxu1 %vm72_vm1, %v4078_v43  ;;  %3795 = vmatpush3.bf16.msra.mxu0 %v3794_v44  ;;  %v64_v44 = vld [vmem:[%s4625_s4] sm:$0xff] }
  0x45   :  { %3801 = vmatpush3.bf16.msra.mxu1 %v3800_v45  ;;  %3796 = vmatprep.subr.bf16.mxu0 %v3903_v3 }
  0x46   :  { %3802 = vmatprep.subr.bf16.mxu1 %v3903_v3  ;;  %3537 = vmatprep.mubr.msk.f32.mxu0 %vm3904_vm0, %v3905_v11 }
  0x47   :  { %3548 = vmatprep.mubr.msk.f32.mxu1 %vm3904_vm0, %v3905_v11 }
  0x48   :  { %3798 = vmatpush3.bf16.msra.mxu0 %v3797_v49 }
  0x49   :  { %3804 = vmatpush3.bf16.msra.mxu1 %v3803_v51  ;;  %3805 = vmatprep.subr.bf16.mxu0 %v3903_v3 }
  0x4a   :  { %3811 = vmatprep.subr.bf16.mxu1 %v3903_v3 }
  0x4b   :  { %3538 = vmatmul.mubr.msk.f32.vlgmr.msra.gmra.mrb[16].mxu0 %vm72_vm1, %v4001_v18 }
  0x4c   :  { %3549 = vmatmul.mubr.msk.f32.vlgmr.msra.gmra.mrb[16].mxu1 %vm72_vm1, %v4001_v18  ;;  %3807 = vmatpush3.bf16.msra.mxu0 %v3806_v55 }
  0x4d   :  { %3813 = vmatpush3.bf16.msra.mxu1 %v3812_v57  ;;  %3808 = vmatprep.subr.bf16.mxu0 %v3903_v3 }
  0x4e   :  { %3814 = vmatprep.subr.bf16.mxu1 %v3903_v3  ;;  %3559 = vmatprep.mubr.msk.f32.mxu0 %vm3904_vm0, %v3905_v11 }
  0x4f   :  { %3570 = vmatprep.mubr.msk.f32.mxu1 %vm3904_vm0, %v3905_v11 }
  0x50   :  { %3810 = vmatpush3.bf16.msra.mxu0 %v3809_v61 }
  0x51   :  { %3816 = vmatpush3.bf16.msra.mxu1 %v3815_v63  ;;  %3817 = vmatprep.subr.bf16.mxu0 %v3903_v3 }
  0x52   :  { %3823 = vmatprep.subr.bf16.mxu1 %v3903_v3 }
  0x53   :  { %3560 = vmatmul.mubr.msk.f32.vlgmr.msra.gmra.mrb[18].mxu0 %vm72_vm1, %v4001_v18 }
  0x54   :  { %3571 = vmatmul.mubr.msk.f32.vlgmr.msra.gmra.mrb[18].mxu1 %vm72_vm1, %v4001_v18  ;;  %3819 = vmatpush3.bf16.msra.mxu0 %v3818_v4  ;;  %v1262_v18 = vld [vmem:[%s4624_s3 + $0xb8] sm:$0xff] }
  0x55   :  { %3825 = vmatpush3.bf16.msra.mxu1 %v3824_v6  ;;  %3820 = vmatprep.subr.bf16.mxu0 %v3903_v3  ;;  %v3827_v12 = vpack.c.bf16 %v1262_v18, %v1261_v9  ;;  %v69_v9 = vld [vmem:[%s4625_s4 + $0x28] sm:$0xff] }
  0x56   :  { %3826 = vmatprep.subr.bf16.mxu1 %v3903_v3  ;;  %3581 = vmatprep.mubr.msk.f32.mxu0 %vm3904_vm0, %v3905_v11 }
  0x57   :  { %3592 = vmatprep.mubr.msk.f32.mxu1 %vm3904_vm0, %v3905_v11 }
  0x58   :  { %3822 = vmatpush3.bf16.msra.mxu0 %v3821_v10 }
  0x59   :  { %3828 = vmatpush3.bf16.msra.mxu1 %v3827_v12  ;;  %3829 = vmatprep.subr.bf16.mxu0 %v3903_v3 }
  0x5a   :  { %3835 = vmatprep.subr.bf16.mxu1 %v3903_v3 }
  0x5b   :  { %3582 = vmatmul.mubr.msk.f32.vlgmr.msra.gmra.mrb[20].mxu0 %vm72_vm1, %v4078_v43 }
  0x5c   :  { %3593 = vmatmul.mubr.msk.f32.vlgmr.msra.gmra.mrb[20].mxu1 %vm72_vm1, %v4078_v43  ;;  %3831 = vmatpush3.bf16.msra.mxu0 %v3830_v16 }
  0x5d   :  { %3837 = vmatpush3.bf16.msra.mxu1 %v3836_v19  ;;  %3832 = vmatprep.subr.bf16.mxu0 %v3903_v3 }
  0x5e   :  { %3838 = vmatprep.subr.bf16.mxu1 %v3903_v3  ;;  %3603 = vmatprep.mubr.msk.f32.mxu0 %vm3904_vm0, %v3905_v11 }
  0x5f   :  { %3614 = vmatprep.mubr.msk.f32.mxu1 %vm3904_vm0, %v3905_v11 }
  0x60   :  { %3834 = vmatpush3.bf16.msra.mxu0 %v3833_v23 }
  0x61   :  { %3840 = vmatpush3.bf16.msra.mxu1 %v3839_v25  ;;  %3617 = vmatprep.subr.mxu0 %v3905_v11 }
  0x62   :  { %3622 = vmatprep.subr.mxu1 %v3905_v11 }
  0x63   :  { %3604 = vmatmul.mubr.msk.f32.vlgmr.msra.gmra.mrb[22].mxu0 %vm72_vm1, %v4078_v43 }
  0x64   :  { %3615 = vmatmul.mubr.msk.f32.vlgmr.msra.gmra.mrb[22].mxu1 %vm72_vm1, %v4078_v43  ;;  %3619 = vmatprep.mubr.msk.f32.mxu0 %vm3904_vm0, %v3905_v11 }
  0x65   :  { %3624 = vmatprep.mubr.msk.f32.mxu1 %vm3904_vm0, %v3905_v11 }
  0xde   :  { %v142_v3 = vpop.f32.mrb[0].mxu0 }
  0xdf   :  { %v3363_v26 = vpop.f32.mrb[1].mxu0  ;;  %v212_v27 = vpop.f32.mrb[0].mxu1  ;;  %v143_v51 = vadd.f32 %v142_v3, %v64_v44 }
  0xe0   :  { %v3374_v28 = vpop.f32.mrb[1].mxu1  ;;  %v213_v52 = vadd.f32 %v212_v27, %v65_v48  ;;  %v1271_v26 = vld [vmem:[%s4627_s6] sm:$0xff]  ;;  %v1272_v27 = vld [vmem:[%s4627_s6 + $0x8] sm:$0xff] }
  0xe6   :  { %v282_v29 = vpop.f32.mrb[2].mxu0 }
  0xe7   :  { %v3385_v30 = vpop.f32.mrb[3].mxu0  ;;  %v352_v31 = vpop.f32.mrb[2].mxu1  ;;  %v283_v63 = vadd.f32 %v282_v29, %v66_v56 }
  0xe8   :  { %v3396_v32 = vpop.f32.mrb[3].mxu1  ;;  %v353_v0 = vadd.f32 %v352_v31, %v67_v60 }
  0xee   :  { %v425_v33 = vpop.f32.mrb[4].mxu0 }
  0xef   :  { %v3407_v34 = vpop.f32.mrb[5].mxu0  ;;  %v495_v35 = vpop.f32.mrb[4].mxu1  ;;  %v426_v12 = vadd.f32 %v425_v33, %v68_v5 }
  0xf0   :  { %v3418_v36 = vpop.f32.mrb[5].mxu1  ;;  %v496_v13 = vadd.f32 %v495_v35, %v69_v9 }
  0xf6   :  { %v4402_v37 = vpop.f32.mrb[6].mxu0 }
  0xf7   :  { %v3429_v43 = vpop.f32.mrb[7].mxu0  ;;  %v4404_v38 = vpop.f32.mrb[6].mxu1  ;;  %v566_v25 = vadd.f32 %v4402_v37, %v70_v17 }
  0xf8   :  { %v3440_v39 = vpop.f32.mrb[7].mxu1  ;;  %v636_v3 = vadd.f32 %v4404_v38, %v71_v22 }
  0xfe   :  { %v745_v42 = vpop.f32.mrb[8].mxu0 }
  0xff   :  { %v746_v45 = vadd.f32 %v745_v42, %v671_v40  ;;  %v815_v46 = vpop.f32.mrb[8].mxu1  ;;  %v3451_v47 = vpop.f32.mrb[9].mxu0 }
 0x100   :  { %v816_v49 = vadd.f32 %v815_v46, %v672_v41  ;;  %v3462_v50 = vpop.f32.mrb[9].mxu1  ;;  %v1839_v46 = vld [vmem:[%s4628_s7] sm:$0xff] }
 0x101   :  { %3618 = vmatpush3.xpose.msk.msra.mxu0 %vm1840_vm2, %v746_v45 }
 0x102   :  { %3623 = vmatpush3.xpose.msk.msra.mxu1 %vm1840_vm2, %v816_v49  ;;  %3627 = vmatprep.subr.mxu0 %v3905_v11 }
 0x103   :  { %3632 = vmatprep.subr.mxu1 %v3905_v11 }
 0x104   :  { %3620 = vmatmul.mubr.msk.f32.vlgmr.msra.gmra.mrb[24].mxu0 %vm1840_vm2, %v143_v51 }
 0x105   :  { %3625 = vmatmul.mubr.msk.f32.vlgmr.msra.gmra.mrb[24].mxu1 %vm1840_vm2, %v213_v52  ;;  %3629 = vmatprep.mubr.msk.f32.mxu0 %vm3904_vm0, %v3905_v11 }
 0x106   :  { %v885_v55 = vpop.f32.mrb[10].mxu0  ;;  %3634 = vmatprep.mubr.msk.f32.mxu1 %vm3904_vm0, %v3905_v11 }
 0x107   :  { %v886_v57 = vadd.f32 %v885_v55, %v673_v53  ;;  %v955_v58 = vpop.f32.mrb[10].mxu1  ;;  %v3473_v59 = vpop.f32.mrb[11].mxu0 }
 0x108   :  { %v956_v61 = vadd.f32 %v955_v58, %v674_v54  ;;  %v3484_v62 = vpop.f32.mrb[11].mxu1 }
 0x109   :  { %3628 = vmatpush3.xpose.msk.msra.mxu0 %vm1840_vm2, %v886_v57 }
 0x10a   :  { %3633 = vmatpush3.xpose.msk.msra.mxu1 %vm1840_vm2, %v956_v61  ;;  %3637 = vmatprep.subr.mxu0 %v3905_v11 }
 0x10b   :  { %3642 = vmatprep.subr.mxu1 %v3905_v11 }
 0x10c   :  { %3630 = vmatmul.mubr.msk.f32.vlgmr.msra.gmra.mrb[26].mxu0 %vm1840_vm2, %v283_v63 }
 0x10d   :  { %3635 = vmatmul.mubr.msk.f32.vlgmr.msra.gmra.mrb[26].mxu1 %vm1840_vm2, %v353_v0  ;;  %3639 = vmatprep.mubr.msk.f32.mxu0 %vm3904_vm0, %v3905_v11 }
 0x10e   :  { %v1025_v4 = vpop.f32.mrb[12].mxu0  ;;  %3644 = vmatprep.mubr.msk.f32.mxu1 %vm3904_vm0, %v3905_v11 }
 0x10f   :  { %v1026_v6 = vadd.f32 %v1025_v4, %v675_v1  ;;  %v1095_v7 = vpop.f32.mrb[12].mxu1  ;;  %v3495_v8 = vpop.f32.mrb[13].mxu0 }
 0x110   :  { %v1096_v10 = vadd.f32 %v1095_v7, %v676_v2  ;;  %v3506_v18 = vpop.f32.mrb[13].mxu1 }
 0x111   :  { %3638 = vmatpush3.xpose.msk.msra.mxu0 %vm1840_vm2, %v1026_v6 }
 0x112   :  { %3643 = vmatpush3.xpose.msk.msra.mxu1 %vm1840_vm2, %v1096_v10  ;;  %3647 = vmatprep.subr.mxu0 %v3905_v11 }
 0x113   :  { %3652 = vmatprep.subr.mxu1 %v3905_v11 }
 0x114   :  { %3640 = vmatmul.mubr.msk.f32.vlgmr.msra.gmra.mrb[28].mxu0 %vm1840_vm2, %v426_v12 }
 0x115   :  { %3645 = vmatmul.mubr.msk.f32.vlgmr.msra.gmra.mrb[28].mxu1 %vm1840_vm2, %v496_v13  ;;  %3649 = vmatprep.mubr.msk.f32.mxu0 %vm3904_vm0, %v3905_v11 }
 0x116   :  { %v1165_v16 = vpop.f32.mrb[14].mxu0  ;;  %3654 = vmatprep.mubr.msk.f32.mxu1 %vm3904_vm0, %v3905_v11 }
 0x117   :  { %v1166_v19 = vadd.f32 %v1165_v16, %v677_v14  ;;  %v1235_v20 = vpop.f32.mrb[14].mxu1  ;;  %v3517_v21 = vpop.f32.mrb[15].mxu0 }
 0x118   :  { %v1236_v23 = vadd.f32 %v1235_v20, %v678_v15  ;;  %v3528_v24 = vpop.f32.mrb[15].mxu1 }
 0x119   :  { %3648 = vmatpush3.xpose.msk.msra.mxu0 %vm1840_vm2, %v1166_v19 }
 0x11a   :  { %3653 = vmatpush3.xpose.msk.msra.mxu1 %vm1840_vm2, %v1236_v23  ;;  %3657 = vmatprep.subr.mxu0 %v3905_v11 }
 0x11b   :  { %3662 = vmatprep.subr.mxu1 %v3905_v11 }
 0x11c   :  { %3650 = vmatmul.mubr.msk.f32.vlgmr.msra.gmra.mrb[30].mxu0 %vm1840_vm2, %v566_v25 }
 0x11d   :  { %3655 = vmatmul.mubr.msk.f32.vlgmr.msra.gmra.mrb[30].mxu1 %vm1840_vm2, %v636_v3  ;;  %3659 = vmatprep.mubr.msk.f32.mxu0 %vm3904_vm0, %v3905_v11 }
 0x11e   :  { %3664 = vmatprep.mubr.msk.f32.mxu1 %vm3904_vm0, %v3905_v11  ;;  %v1345_v28 = vpop.f32.mrb[16].mxu0 }
 0x11f   :  { %v1346_v29 = vadd.f32 %v1345_v28, %v1271_v26  ;;  %v3539_v30 = vpop.f32.mrb[17].mxu0  ;;  %v1415_v31 = vpop.f32.mrb[16].mxu1 }
 0x120   :  { %v1416_v32 = vadd.f32 %v1415_v31, %v1272_v27  ;;  %v3550_v33 = vpop.f32.mrb[17].mxu1 }
 0x121   :  { %3658 = vmatpush3.msra.mxu0 %v1346_v29 }
 0x122   :  { %3663 = vmatpush3.msra.mxu1 %v1416_v32  ;;  %3667 = vmatprep.subr.mxu0 %v3905_v11 }
 0x123   :  { %3672 = vmatprep.subr.mxu1 %v3905_v11 }
 0x126   :  { %v4504_v34 = vpop.f32.mrb[18].mxu0 }
 0x127   :  { %v3561_v35 = vpop.f32.mrb[19].mxu0  ;;  %v4506_v36 = vpop.f32.mrb[18].mxu1 }
 0x128   :  { %v3572_v37 = vpop.f32.mrb[19].mxu1 }
 0x12e   :  { %v4508_v43 = vpop.f32.mrb[20].mxu0 }
 0x12f   :  { %v3583_v38 = vpop.f32.mrb[21].mxu0  ;;  %v4510_v39 = vpop.f32.mrb[20].mxu1 }
 0x130   :  { %v3594_v40 = vpop.f32.mrb[21].mxu1 }
 0x136   :  { %v4512_v41 = vpop.f32.mrb[22].mxu0 }
 0x137   :  { %v4514_v42 = vpop.f32.mrb[22].mxu1  ;;  %v3605_v44 = vpop.f32.mrb[23].mxu0 }
 0x138   :  { %v3616_v45 = vpop.f32.mrb[23].mxu1 }
 0x1d7   :  { %v1913_v47 = vpop.f32.mrb[24].mxu0 }
 0x1d8   :  { %v1914_v48 = vadd.f32 %v1913_v47, %v1839_v46  ;;  %v1989_v49 = vpop.f32.mrb[24].mxu1  ;;  %v3621_v50 = vpop.f32.mrb[25].mxu0 }
 0x1d9   :  { %v3626_v51 = vpop.f32.mrb[25].mxu1  ;;  %v1990_v52 = vadd.f32 %v1989_v49, %v1839_v46 }
 0x1da   :  { %v2449_v53 = vsel %vm1840_vm2, %v1914_v48, -inf }
 0x1db   :  { %2450 = vmax.xlane.f32.xlu0 %v2449_v53  ;;  %v2452_v54 = vsel %vm1840_vm2, %v1990_v52, -inf }
 0x1df   :  { %2453 = vmax.xlane.f32.xlu0 %v2452_v54  ;;  %v2065_v55 = vpop.f32.mrb[26].mxu0 }
 0x1e0   :  { %v2141_v56 = vpop.f32.mrb[26].mxu1  ;;  %v2066_v57 = vadd.f32 %v2065_v55, %v1839_v46  ;;  %v3631_v58 = vpop.f32.mrb[27].mxu0 }
 0x1e1   :  { %v3636_v59 = vpop.f32.mrb[27].mxu1  ;;  %v2142_v60 = vadd.f32 %v2141_v56, %v1839_v46 }
 0x1e2   :  { %v2455_v61 = vsel %vm1840_vm2, %v2066_v57, -inf }
 0x1e3   :  { %2456 = vmax.xlane.f32.xlu1 %v2455_v61  ;;  %v2458_v62 = vsel %vm1840_vm2, %v2142_v60, -inf }
 0x1e7   :  { %2459 = vmax.xlane.f32.xlu1 %v2458_v62  ;;  %v2217_v63 = vpop.f32.mrb[28].mxu0 }
 0x1e8   :  { %v2293_v0 = vpop.f32.mrb[28].mxu1  ;;  %v2218_v1 = vadd.f32 %v2217_v63, %v1839_v46  ;;  %v3641_v2 = vpop.f32.mrb[29].mxu0 }
 0x1e9   :  { %v2294_v4 = vadd.f32 %v2293_v0, %v1839_v46  ;;  %v3646_v5 = vpop.f32.mrb[29].mxu1 }
 0x1ea   :  { %v2461_v6 = vsel %vm1840_vm2, %v2218_v1, -inf }
 0x1eb   :  { %v2464_v7 = vsel %vm1840_vm2, %v2294_v4, -inf  ;;  %2462 = vmax.xlane.f32.xlu0 %v2461_v6 }
 0x1ec   :  { %2465 = vmax.xlane.f32.xlu1 %v2464_v7  ;;  %v1274_v7 = vld [vmem:[%s4627_s6 + $0x18] sm:$0xff] }
 0x1ef   :  { %v2369_v8 = vpop.f32.mrb[30].mxu0 }
 0x1f0   :  { %v2370_v9 = vadd.f32 %v2369_v8, %v1839_v46  ;;  %v2445_v10 = vpop.f32.mrb[30].mxu1  ;;  %v3651_v18 = vpop.f32.mrb[31].mxu0 }
 0x1f1   :  { %v2446_v12 = vadd.f32 %v2445_v10, %v1839_v46  ;;  %v3656_v13 = vpop.f32.mrb[31].mxu1  ;;  %v1556_v18 = vadd.f32 %v4506_v36, %v1274_v7  ;;  %v1276_v36 = vld [vmem:[%s4627_s6 + $0x28] sm:$0xff] }
 0x1f2   :  { %v2467_v14 = vsel %vm1840_vm2, %v2370_v9, -inf }
 0x1f3   :  { %v2470_v15 = vsel %vm1840_vm2, %v2446_v12, -inf  ;;  %2468 = vmax.xlane.f32.xlu0 %v2467_v14 }
 0x1f4   :  { %2471 = vmax.xlane.f32.xlu1 %v2470_v15 }
 0x268   :  { %v2451_v16 = vpop.xlane.xlu0 %2450 }
 0x269   :  { %v2473_v17 = vsub.f32 %v1914_v48, %v2451_v16 }
 0x26b   :  { %v2481_v19 = vmul.f32 1.442695, %v2473_v17 }
 0x26c   :  { %v2454_v20 = vpop.xlane.xlu0 %2453 }
 0x26d   :  { %3847 = vpow2.f32 %v2481_v19  ;;  %v2474_v21 = vsub.f32 %v1990_v52, %v2454_v20  ;;  %v1696_v20 = vadd.f32 %v4510_v39, %v1276_v36 }
 0x26f   :  { %v2483_v22 = vmul.f32 1.442695, %v2474_v21 }
 0x270   :  { %v2457_v23 = vpop.xlane.xlu1 %2456 }
 0x271   :  { %3849 = vpow2.f32 %v2483_v22  ;;  %v2475_v24 = vsub.f32 %v2066_v57, %v2457_v23  ;;  %v1278_v23 = vld [vmem:[%s4627_s6 + $0x38] sm:$0xff] }
 0x273   :  { %v2485_v25 = vmul.f32 1.442695, %v2475_v24 }
 0x274   :  { %v2460_v3 = vpop.xlane.xlu1 %2459 }
 0x275   :  { %3851 = vpow2.f32 %v2485_v25  ;;  %v2476_v26 = vsub.f32 %v2142_v60, %v2460_v3 }
 0x277   :  { %v3848_v27 = vpop.eup %3847  ;;  %v2487_v28 = vmul.f32 1.442695, %v2476_v26  ;;  %v1836_v26 = vadd.f32 %v4514_v42, %v1278_v23 }
 0x278   :  { %v2463_v29 = vpop.xlane.xlu0 %2462  ;;  %v2497_v30 = vsel %vm1840_vm2, %v3848_v27, 0.0 }
 0x279   :  { %3853 = vpow2.f32 %v2487_v28  ;;  %v2466_v31 = vpop.xlane.xlu1 %2465  ;;  %v2477_v32 = vsub.f32 %v2218_v1, %v2463_v29  ;;  %2498 = vadd.xlane.f32.xlu0 %v2497_v30  ;;  %v1273_v1 = vld [vmem:[%s4627_s6 + $0x10] sm:$0xff] }
 0x27a   :  { %v2478_v33 = vsub.f32 %v2294_v4, %v2466_v31  ;;  %v1486_v6 = vadd.f32 %v4504_v34, %v1273_v1  ;;  %v1275_v34 = vld [vmem:[%s4627_s6 + $0x20] sm:$0xff] }
 0x27b   :  { %v3850_v35 = vpop.eup %3849  ;;  %v2489_v37 = vmul.f32 1.442695, %v2477_v32  ;;  %v1626_v15 = vadd.f32 %v4508_v43, %v1275_v34  ;;  %v1277_v43 = vld [vmem:[%s4627_s6 + $0x30] sm:$0xff]  ;;  %s3906_s6 = smov [#allocation2]  }
 0x27c   :  { %v2491_v38 = vmul.f32 1.442695, %v2478_v33  ;;  %v2500_v40 = vsel %vm1840_vm2, %v3850_v35, 0.0  ;;  %v1766_v25 = vadd.f32 %v4512_v41, %v1277_v43  ;;  %s3142_s28 = sshll.u32 %s3906_s6, 4  ;;  %s3143_s28 = int_to_ptr.vmem [resolvable:$true] %s3142_s28 }
 0x27d   :  { %3855 = vpow2.f32 %v2489_v37  ;;  %2501 = vadd.xlane.f32.xlu1 %v2500_v40  ;;  %s3879_s29 = scalar_lea.vmem %s3143_s28, 256  ;;  %p3884_p1 = scmp.lt.s32.totalorder %s3143_s28, %s3143_s28 }
 0x27e   :  { %3857 = vpow2.f32 %v2491_v38  ;;  %p3880_p0 = scmp.ne.s32.totalorder %s3143_s28, %s3879_s29  ;;  %p3885_p2 = scmp.lt.s32.totalorder %s3879_s29, %s3879_s29 }
 0x27f   :  { %v3852_v44 = vpop.eup %3851 }
 0x280   :  { %v2469_v45 = vpop.xlane.xlu0 %2468  ;;  %v2503_v46 = vsel %vm1840_vm2, %v3852_v44, 0.0  ;;  %p3886_p3 = por %p3885_p2, %p3884_p1 }
 0x281   :  { %v2472_v47 = vpop.xlane.xlu1 %2471  ;;  %v2479_v48 = vsub.f32 %v2370_v9, %v2469_v45  ;;  %2504 = vadd.xlane.f32.xlu0 %v2503_v46 }
 0x282   :  { %v2480_v49 = vsub.f32 %v2446_v12, %v2472_v47  ;;  %p3887_p4 = pnand %p3886_p3, %p3880_p0 }
 0x283   :  { %v3854_v50 = vpop.eup %3853  ;;  %v2493_v51 = vmul.f32 1.442695, %v2479_v48 }
 0x284   :  { %v2495_v52 = vmul.f32 1.442695, %v2480_v49  ;;  %v2506_v53 = vsel %vm1840_vm2, %v3854_v50, 0.0 }
 0x285   :  { %3859 = vpow2.f32 %v2493_v51  ;;  %2507 = vadd.xlane.f32.xlu1 %v2506_v53 }
 0x286   :  { %3861 = vpow2.f32 %v2495_v52 }
 0x287   :  { %v4531_v54 = vpop.eup %3855 }
 0x288   :  { %v4533_v55 = vpop.eup %3857  ;;  %v2509_v56 = vsel %vm1840_vm2, %v4531_v54, 0.0 }
 0x289   :  { %v2512_v57 = vsel %vm1840_vm2, %v4533_v55, 0.0  ;;  %2510 = vadd.xlane.f32.xlu0 %v2509_v56 }
 0x28a   :  { %2513 = vadd.xlane.f32.xlu1 %v2512_v57 }
 0x28f   :  { %v4539_v58 = vpop.eup %3859 }
 0x290   :  { %v4541_v59 = vpop.eup %3861  ;;  %v2515_v60 = vsel %vm1840_vm2, %v4539_v58, 0.0 }
 0x291   :  { %v2518_v61 = vsel %vm1840_vm2, %v4541_v59, 0.0  ;;  %2516 = vadd.xlane.f32.xlu0 %v2515_v60 }
 0x292   :  { %2519 = vadd.xlane.f32.xlu1 %v2518_v61 }
 0x306   :  { %v2499_v62 = vpop.xlane.xlu0 %2498 }
 0x307   :  { %3863 = vrcp.f32 %v2499_v62 }
 0x30a   :  { %v2502_v63 = vpop.xlane.xlu1 %2501 }
 0x30b   :  { %3865 = vrcp.f32 %v2502_v63 }
 0x30e   :  { %v2505_v0 = vpop.xlane.xlu0 %2504 }
 0x30f   :  { %3867 = vrcp.f32 %v2505_v0 }
 0x311   :  { %v3864_v2 = vpop.eup %3863 }
 0x312   :  { %v2529_v4 = vmul.f32 %v3864_v2, %v3848_v27  ;;  %v2508_v5 = vpop.xlane.xlu1 %2507 }
 0x313   :  { %3869 = vrcp.f32 %v2508_v5 }
 0x314   :  { %3660 = vmatmul.mubr.msk.f32.vlgmr.msra.gmra.mrb[32].mxu0 %vm1840_vm2, %v2529_v4 }
 0x315   :  { %v3866_v8 = vpop.eup %3865  ;;  %3668 = vmatpush3.msra.mxu0 %v1486_v6  ;;  %3669 = vmatprep.mubr.msk.f32.mxu0 %vm3904_vm0, %v3905_v11 }
 0x316   :  { %v2530_v9 = vmul.f32 %v3866_v8, %v3850_v35  ;;  %v2511_v10 = vpop.xlane.xlu0 %2510  ;;  %3677 = vmatprep.subr.mxu0 %v3905_v11 }
 0x317   :  { %v2514_v12 = vpop.xlane.xlu1 %2513  ;;  %3871 = vrcp.f32 %v2511_v10 }
 0x318   :  { %3873 = vrcp.f32 %v2514_v12  ;;  %3665 = vmatmul.mubr.msk.f32.vlgmr.msra.gmra.mrb[32].mxu1 %vm1840_vm2, %v2530_v9 }
 0x319   :  { %v3868_v13 = vpop.eup %3867  ;;  %3673 = vmatpush3.msra.mxu1 %v1556_v18  ;;  %3674 = vmatprep.mubr.msk.f32.mxu1 %vm3904_vm0, %v3905_v11 }
 0x31a   :  { %v2531_v14 = vmul.f32 %v3868_v13, %v3852_v44  ;;  %3682 = vmatprep.subr.mxu1 %v3905_v11 }
 0x31c   :  { %3670 = vmatmul.mubr.msk.f32.vlgmr.msra.gmra.mrb[34].mxu0 %vm1840_vm2, %v2531_v14 }
 0x31d   :  { %v3870_v16 = vpop.eup %3869  ;;  %3678 = vmatpush3.msra.mxu0 %v1626_v15  ;;  %3679 = vmatprep.mubr.msk.f32.mxu0 %vm3904_vm0, %v3905_v11 }
 0x31e   :  { %v2532_v17 = vmul.f32 %v3870_v16, %v3854_v50  ;;  %v2517_v19 = vpop.xlane.xlu0 %2516  ;;  %3687 = vmatprep.subr.mxu0 %v3905_v11 }
 0x31f   :  { %v2520_v21 = vpop.xlane.xlu1 %2519  ;;  %3875 = vrcp.f32 %v2517_v19 }
 0x320   :  { %3877 = vrcp.f32 %v2520_v21  ;;  %3675 = vmatmul.mubr.msk.f32.vlgmr.msra.gmra.mrb[34].mxu1 %vm1840_vm2, %v2532_v17 }
 0x321   :  { %v3872_v22 = vpop.eup %3871  ;;  %3683 = vmatpush3.msra.mxu1 %v1696_v20  ;;  %3684 = vmatprep.mubr.msk.f32.mxu1 %vm3904_vm0, %v3905_v11 }
 0x322   :  { %v3874_v24 = vpop.eup %3873  ;;  %v2533_v39 = vmul.f32 %v3872_v22, %v4531_v54  ;;  %3692 = vmatprep.subr.mxu1 %v3905_v11 }
 0x323   :  { %v2534_v3 = vmul.f32 %v3874_v24, %v4533_v55 }
 0x324   :  { %3680 = vmatmul.mubr.msk.f32.vlgmr.msra.gmra.mrb[36].mxu0 %vm1840_vm2, %v2533_v39 }
 0x325   :  { %3685 = vmatmul.mubr.msk.f32.vlgmr.msra.gmra.mrb[36].mxu1 %vm1840_vm2, %v2534_v3  ;;  %3688 = vmatpush3.msra.mxu0 %v1766_v25 }
 0x326   :  { %3693 = vmatpush3.msra.mxu1 %v1836_v26  ;;  %3689 = vmatprep.mubr.msk.f32.mxu0 %vm3904_vm0, %v3905_v11 }
 0x327   :  { %3694 = vmatprep.mubr.msk.f32.mxu1 %vm3904_vm0, %v3905_v11 }
 0x329   :  { %v3876_v27 = vpop.eup %3875 }
 0x32a   :  { %v3878_v28 = vpop.eup %3877  ;;  %v2535_v41 = vmul.f32 %v3876_v27, %v4539_v58 }
 0x32b   :  { %v2536_v29 = vmul.f32 %v3878_v28, %v4541_v59 }
 0x32c   :  { %3690 = vmatmul.mubr.msk.f32.vlgmr.msra.gmra.mrb[38].mxu0 %vm1840_vm2, %v2535_v41 }
 0x32d   :  { %3695 = vmatmul.mubr.msk.f32.vlgmr.msra.gmra.mrb[38].mxu1 %vm1840_vm2, %v2536_v29 }
 0x3e7   :  { %v2606_v42 = vpop.f32.mrb[32].mxu0 }
 0x3e8   :  { %v3661_v30 = vpop.f32.mrb[33].mxu0  ;;  %v3121_v32 = vsel %vm72_vm1, %v2606_v42, 0.0 }
 0x3eb   :  { %v2679_v31 = vpop.f32.mrb[32].mxu1 }
 0x3ec   :  { %v3122_v33 = vsel %vm72_vm1, %v2679_v31, 0.0  ;;  %v3666_v35 = vpop.f32.mrb[33].mxu1 }
 0x3ed   :  { %v3123_v37 = vadd.f32 %v3122_v33, %v3121_v32 }
 0x3ef   :  { %v2752_v11 = vpop.f32.mrb[34].mxu0 }
 0x3f0   :  { %v3124_v38 = vsel %vm72_vm1, %v2752_v11, 0.0  ;;  %v3671_v40 = vpop.f32.mrb[35].mxu0 }
 0x3f1   :  { %v3125_v44 = vadd.f32 %v3124_v38, %v3123_v37 }
 0x3f3   :  { %v2825_v45 = vpop.f32.mrb[34].mxu1 }
 0x3f4   :  { %v3126_v46 = vsel %vm72_vm1, %v2825_v45, 0.0  ;;  %v3676_v47 = vpop.f32.mrb[35].mxu1 }
 0x3f5   :  { %v3127_v48 = vadd.f32 %v3126_v46, %v3125_v44 }
 0x3f7   :  { %3135 = vst.msk [vmem:[#allocation2] sm:$0xff] %vm72_vm1, %v3127_v48  ;;  %v2898_v49 = vpop.f32.mrb[36].mxu0 }
 0x3f8   :  { %v3128_v50 = vsel %vm72_vm1, %v2898_v49, 0.0  ;;  %v2971_v51 = vpop.f32.mrb[36].mxu1  ;;  %v3681_v52 = vpop.f32.mrb[37].mxu0 }
 0x3f9   :  { %v3129_v53 = vsel %vm72_vm1, %v2971_v51, 0.0  ;;  %v3686_v54 = vpop.f32.mrb[37].mxu1 }
 0x3fa   :  { %v3130_v55 = vadd.f32 %v3129_v53, %v3128_v50 }
 0x3ff   :  { %v3044_v56 = vpop.f32.mrb[38].mxu0 }
 0x400   :  { %v3131_v57 = vsel %vm72_vm1, %v3044_v56, 0.0  ;;  %v3117_v58 = vpop.f32.mrb[38].mxu1  ;;  %v3691_v59 = vpop.f32.mrb[39].mxu0 }
 0x401   :  { %v3132_v60 = vadd.f32 %v3131_v57, %v3130_v55  ;;  %v3696_v61 = vpop.f32.mrb[39].mxu1  ;;  %v3133_v62 = vsel %vm72_vm1, %v3117_v58, 0.0 }
 0x403   :  { %v3134_v63 = vadd.f32 %v3133_v62, %v3132_v60 }
 0x405   :  { %3136 = vst.msk [vmem:[#allocation2 + $0x8] sm:$0xff] %vm72_vm1, %v3134_v63 }
 0x406   :  { %3890 = shalt.err (!%p3887_p4)
}
 0x407   :  { %s3891_s1 = scalar_lea.hbm %s4629_s8, 256 }
 0x408   :  { %p3892_p5 = scmp.ne.s32.totalorder %s4629_s8, %s3891_s1  ;;  %p3895_p6 = scmp.lt.u32.totalorder %s3891_s1, %s4629_s8 }
 0x40a   :  { %p3897_p7 = pnand %p3895_p6, %p3892_p5 }
 0x40c   :  { %3900 = shalt.err (!%p3897_p7)
}
 0x40d   :  { %s3907_s13 = smov 128   ;;  %s3908_s14 = smov 8  }
 0x40e   :  { %3148 = dma.vmem_to_hbm [thread:$0]  %s3143_s28, 256, %s4629_s8, [#allocation3], %s3907_s13, %s3907_s13, %s3908_s14  }
 0x40f   :  { %3901 = dma.done.wait [#allocation3], 256  }
 0x410   :  { %3902 = vsyncadd [#allocation3], 4294967040 }
 0x411   :  { %3152 = vsyncpa [#allocation3], 1 }

</bundles_post_ra>
